<compile_context>
chip_gen: v7x
topology: tpu7x:2x2x1
jax: 0.10.0
libtpu: 0.0.40
codegen_flags: <defaults>
</compile_context>

<pallas_src>
import functools
import math

import jax
import jax.numpy as jnp
from jax import lax
from jax.experimental import pallas as pl
from jax.experimental.pallas import tpu as pltpu


def mha_kernel(x_ref, wq_ref, bq_ref, wkv_ref, bkv_ref, wo_ref, bo_ref,
               gamma_ref, beta_ref, out_ref, kv_ref, *,
               num_heads, d_out, q_tile, hoist_kv):
    """One (batch, query-tile) grid step: fused MHA + residual + LayerNorm.

    x_ref   : (1, S, D_in)   f32   full sequence of this batch element
    wq_ref  : (D_in, H*d)    bf16  fused per-head query weights, pre-scaled by 1/sqrt(d)
    bq_ref  : (1, H*d)       f32   pre-scaled by 1/sqrt(d)
    wkv_ref : (D_in, 2*H*d)  bf16  fused per-head [key | value] weights
    bkv_ref : (1, 2*H*d)     f32
    wo_ref  : (H*d, D_in)    bf16  output projection
    bo_ref / gamma_ref / beta_ref : (1, D_in) f32
    out_ref : (1, Tq, D_in)  f32
    kv_ref  : (S, 2*H*d)     bf16  persistent scratch: projected K|V of this batch elem
    """
    hd = num_heads * d_out
    qi = pl.program_id(1)
    row0 = pl.multiple_of(qi * q_tile, q_tile)

    def project_kv():
        x_full = x_ref[0].astype(jnp.bfloat16)                          # (S, D_in)
        kv = jnp.dot(x_full, wkv_ref[...],
                     preferred_element_type=jnp.float32) + bkv_ref[...]
        kv_ref[...] = kv.astype(jnp.bfloat16)

    if hoist_kv:
        # qi axis is "arbitrary": project K/V once per batch element (qi == 0)
        # and reuse the scratch for every query tile (no re-done MXU work).
        @pl.when(qi == 0)
        def _():
            project_kv()
    else:
        project_kv()

    x_q = x_ref[0, pl.ds(row0, q_tile), :]                              # (Tq, D_in) f32
    # Query projection; softmax scale already folded into wq/bq on the host.
    # Single bf16 cast right after the bias add keeps the live footprint small.
    q_all = (jnp.dot(x_q.astype(jnp.bfloat16), wq_ref[...],
                     preferred_element_type=jnp.float32)
             + bq_ref[...]).astype(jnp.bfloat16)                        # (Tq, H*d)
    kv_all = kv_ref[...]                                                # (S, 2*H*d) bf16

    # Static per-head loop (H is small here; move heads into a lax.fori_loop or a
    # grid axis if num_heads grows >= 8-12 to bound vreg live ranges).
    # NOTE: a head-batched dot_general (reshape to (H, Tq, d)) would fill the
    # 256-deep v6e/v7x MXU better; kept as a per-head loop on the conservative
    # lowering path.
    ctx_heads = []
    for h in range(num_heads):
        q = q_all[:, h * d_out:(h + 1) * d_out]                         # (Tq, d) bf16
        k = kv_all[:, h * d_out:(h + 1) * d_out]                        # (S, d)  bf16
        v = kv_all[:, hd + h * d_out:hd + (h + 1) * d_out]              # (S, d)  bf16

        # q @ k^T without materializing an XLU transpose of k; scale pre-folded.
        scores = lax.dot_general(q, k, (((1,), (1,)), ((), ())),
                                 preferred_element_type=jnp.float32)    # (Tq, S) f32
        scores = scores - jnp.max(scores, axis=-1, keepdims=True)
        p = jnp.exp(scores)
        attn = p * pl.reciprocal(jnp.sum(p, axis=-1, keepdims=True), approx=True)

        ctx = jnp.dot(attn.astype(jnp.bfloat16), v,
                      preferred_element_type=jnp.float32)               # (Tq, d) f32
        ctx_heads.append(ctx.astype(jnp.bfloat16))

    # One wide output projection (contraction K = H*d) instead of H tiny K=d
    # accumulating matmuls: near-full systolic depth, no per-head f32 (Tq, D_in)
    # accumulation traffic.
    ctx_cat = jnp.concatenate(ctx_heads, axis=-1)                       # (Tq, H*d) bf16
    proj = jnp.dot(ctx_cat, wo_ref[...],
                   preferred_element_type=jnp.float32) + bo_ref[...]    # (Tq, D_in)

    # Residual + LayerNorm in f32 (v5e has no bf16 VPU/EUP); single final store.
    y = x_q + proj
    mean = jnp.mean(y, axis=-1, keepdims=True)
    var = jnp.mean(jnp.square(y - mean), axis=-1, keepdims=True)
    normed = (y - mean) * lax.rsqrt(var + 1e-5)
    out_ref[0] = (normed * gamma_ref[...] + beta_ref[...]).astype(out_ref.dtype)


def _pick_q_tile(seq_len, batch):
    """Largest sublane-friendly query tile dividing S (full S if nothing fits).

    When B == 1, prefer a tile giving >= 2 query tiles so the parallel qi axis
    can feed both v7x TensorCores.
    """
    cands = [c for c in (1024, 512, 256, 128, 64, 32, 16, 8) if seq_len % c == 0]
    if not cands:
        return seq_len          # block dim == full array dim is always legal
    if batch == 1:
        for c in cands:
            if seq_len // c >= 2:
                return c
    return cands[0]


def _vmem_limit_bytes():
    """Generation-aware scoped-VMEM budget (~40 MiB on v7x, ~100 MiB on v5e/v6e)."""
    try:
        cap = int(pltpu.get_tpu_info().vmem_capacity_bytes)
    except Exception:
        cap = 64 * 1024 * 1024  # conservative (v7x-sized) fallback
    return max(32 * 1024 * 1024, min(cap - 24 * 1024 * 1024, 100 * 1024 * 1024))


def multi_head_attention(x, params):
    """x: (B, S, D_in) f32. params: dict of stacked per-head f32 weights."""
    B, S, D_in = x.shape
    wq, bq = params["wq"], params["bq"]        # (H, D_in, d), (H, 1, d)
    wk, bk = params["wk"], params["bk"]
    wv, bv = params["wv"], params["bv"]
    wo, bo = params["wo"], params["bo"]        # (H*d, D_in), (1, D_in)
    gamma, beta = params["gamma"], params["beta"]
    H, _, d_out = wq.shape
    scale = 1.0 / math.sqrt(d_out)

    # Fuse per-head projection weights so heads pack along the lane dim, and fold
    # the 1/sqrt(d) softmax scale into BOTH wq and bq (q includes its bias before
    # scaling in the reference), before the bf16 cast.
    def fuse(w):    # (H, D_in, d) -> (D_in, H*d)
        return jnp.transpose(w, (1, 0, 2)).reshape(D_in, H * d_out)

    def fuse_b(b):  # (H, 1, d) -> (1, H*d)
        return jnp.transpose(b, (1, 0, 2)).reshape(1, H * d_out)

    wq_f = (fuse(wq) * scale).astype(jnp.bfloat16)
    bq_f = fuse_b(bq) * scale
    wkv_f = jnp.concatenate([fuse(wk), fuse(wv)], axis=-1).astype(jnp.bfloat16)
    bkv_f = jnp.concatenate([fuse_b(bk), fuse_b(bv)], axis=-1)
    wo_bf = wo.astype(jnp.bfloat16)

    q_tile = _pick_q_tile(S, B)
    num_q_tiles = S // q_tile
    # Hoist the K/V projection across query tiles whenever it doesn't cost
    # megacore parallelism: either B >= 2 (the b axis feeds both v7x cores) or
    # there is only one query tile anyway.
    hoist_kv = (B >= 2) or (num_q_tiles == 1)
    qi_sem = "arbitrary" if hoist_kv else "parallel"

    kernel = functools.partial(mha_kernel, num_heads=H, d_out=d_out,
                               q_tile=q_tile, hoist_kv=hoist_kv)

    # Constant index maps: weights/biases are DMA'd once and stay resident across
    # the grid.  (Single-buffering them via pipeline_mode=pl.Buffered(1) would
    # free a few more MiB on v7x; omitted to stay on the conservative path.)
    full = lambda a: pl.BlockSpec(a.shape, lambda b, qi: (0,) * a.ndim)

    # NOTE: for very long S, a KV-tile grid axis with online softmax (flash style)
    # would bound VMEM independent of S on v7x's 64 MiB part; not needed at BERT
    # scale.
    return pl.pallas_call(
        kernel,
        out_shape=jax.ShapeDtypeStruct((B, S, D_in), jnp.float32),
        grid_spec=pltpu.PrefetchScalarGridSpec(
            num_scalar_prefetch=0,
            grid=(B, num_q_tiles),
            in_specs=[
                # Full sequence per batch element (needed for the K/V projection);
                # constant over qi, so it is not re-DMA'd between query tiles.
                pl.BlockSpec((1, S, D_in), lambda b, qi: (b, 0, 0)),
                full(wq_f), full(bq_f), full(wkv_f), full(bkv_f),
                full(wo_bf), full(bo), full(gamma), full(beta),
            ],
            out_specs=pl.BlockSpec((1, q_tile, D_in), lambda b, qi: (b, qi, 0)),
            scratch_shapes=[pltpu.VMEM((S, 2 * H * d_out), jnp.bfloat16)],
        ),
        compiler_params=pltpu.CompilerParams(
            dimension_semantics=("parallel", qi_sem),
            vmem_limit_bytes=_vmem_limit_bytes(),
        ),
    )(x, wq_f, bq_f, wkv_f, bkv_f, wo_bf, bo, gamma, beta)


def init_params(key, num_heads, dim_inp, dim_out):
    """Deterministic synthetic parameters (PyTorch nn.Linear: y = x W^T + b;
    stored pre-transposed as (in, out))."""
    keys = jax.random.split(key, 8)
    scale_head = 1.0 / math.sqrt(dim_inp)
    scale_out = 1.0 / math.sqrt(dim_out * num_heads)
    return {
        "wq": jax.random.uniform(keys[0], (num_heads, dim_inp, dim_out),
                                 jnp.float32, -scale_head, scale_head),
        "bq": jax.random.uniform(keys[1], (num_heads, 1, dim_out),
                                 jnp.float32, -scale_head, scale_head),
        "wk": jax.random.uniform(keys[2], (num_heads, dim_inp, dim_out),
                                 jnp.float32, -scale_head, scale_head),
        "bk": jax.random.uniform(keys[3], (num_heads, 1, dim_out),
                                 jnp.float32, -scale_head, scale_head),
        "wv": jax.random.uniform(keys[4], (num_heads, dim_inp, dim_out),
                                 jnp.float32, -scale_head, scale_head),
        "bv": jax.random.uniform(keys[5], (num_heads, 1, dim_out),
                                 jnp.float32, -scale_head, scale_head),
        "wo": jax.random.uniform(keys[6], (num_heads * dim_out, dim_inp),
                                 jnp.float32, -scale_out, scale_out),
        "bo": jax.random.uniform(keys[7], (1, dim_inp),
                                 jnp.float32, -scale_out, scale_out),
        "gamma": jnp.ones((1, dim_inp), jnp.float32),
        "beta": jnp.zeros((1, dim_inp), jnp.float32),
    }


def reference(x, p):
    """Pure-JAX f32 reference mirroring the PyTorch forward."""
    H = p["wq"].shape[0]
    ctxs = []
    for h in range(H):
        q = x @ p["wq"][h] + p["bq"][h]
        k = x @ p["wk"][h] + p["bk"][h]
        v = x @ p["wv"][h] + p["bv"][h]
        s = jnp.einsum("bqd,bkd->bqk", q, k) / math.sqrt(q.shape[-1])
        a = jax.nn.softmax(s, axis=-1)
        ctxs.append(jnp.einsum("bqk,bkd->bqd", a, v))
    cat = jnp.concatenate(ctxs, axis=-1)
    proj = cat @ p["wo"] + p["bo"]
    y = x + proj
    mean = jnp.mean(y, axis=-1, keepdims=True)
    var = jnp.mean(jnp.square(y - mean), axis=-1, keepdims=True)
    return (y - mean) * jax.lax.rsqrt(var + 1e-5) * p["gamma"] + p["beta"]


if __name__ == "__main__":
    B, S, D_IN, D_OUT, HEADS = 2, 8, 32, 16, 4

    key = jax.random.PRNGKey(0)
    kx, kp = jax.random.split(key)
    x = jax.random.normal(kx, (B, S, D_IN), jnp.float32)
    params = init_params(kp, HEADS, D_IN, D_OUT)

    out = multi_head_attention(x, params)
    out = jax.block_until_ready(out)

    ref = reference(x, params)
    assert out.shape == (B, S, D_IN)
    # bf16 matmul operands (f32 accumulation) + approx reciprocal -> relaxed
    # tolerance versus the pure-f32 reference.
    assert jnp.allclose(out, ref, atol=3e-2, rtol=3e-2), "mismatch vs reference"
    print("KERNEL_OK")
</pallas_src>

<mosaic_0001>
module attributes {stable_mosaic.version = 11 : i64} {
  func.func @mha_kernel(%arg0: i32, %arg1: i32, %arg2: memref<1x8x32xf32, #tpu.memory_space<vmem>>, %arg3: memref<32x64xbf16, #tpu.memory_space<vmem>>, %arg4: memref<1x64xf32, #tpu.memory_space<vmem>>, %arg5: memref<32x128xbf16, #tpu.memory_space<vmem>>, %arg6: memref<1x128xf32, #tpu.memory_space<vmem>>, %arg7: memref<64x32xbf16, #tpu.memory_space<vmem>>, %arg8: memref<1x32xf32, #tpu.memory_space<vmem>>, %arg9: memref<1x32xf32, #tpu.memory_space<vmem>>, %arg10: memref<1x32xf32, #tpu.memory_space<vmem>>, %arg11: memref<1x8x32xf32, #tpu.memory_space<vmem>>, %arg12: memref<8x128xbf16, #tpu.memory_space<vmem>>) attributes {dimension_semantics = [#tpu.dimension_semantics<parallel>, #tpu.dimension_semantics<arbitrary>], iteration_bounds = array<i64: 2, 1>, scalar_prefetch = 0 : i64, scratch_operands = 1 : i64, tpu.core_type = #tpu.core_type<tc>, window_params = [{transform_indices = @transform_0, window_bounds = array<i64: 1, 8, 32>}, {pipeline_mode = #tpu.pipeline_mode<synchronous>, transform_indices = @transform_1, window_bounds = array<i64: 32, 64>}, {pipeline_mode = #tpu.pipeline_mode<synchronous>, transform_indices = @transform_2, window_bounds = array<i64: 1, 64>}, {pipeline_mode = #tpu.pipeline_mode<synchronous>, transform_indices = @transform_3, window_bounds = array<i64: 32, 128>}, {pipeline_mode = #tpu.pipeline_mode<synchronous>, transform_indices = @transform_4, window_bounds = array<i64: 1, 128>}, {pipeline_mode = #tpu.pipeline_mode<synchronous>, transform_indices = @transform_5, window_bounds = array<i64: 64, 32>}, {pipeline_mode = #tpu.pipeline_mode<synchronous>, transform_indices = @transform_6, window_bounds = array<i64: 1, 32>}, {pipeline_mode = #tpu.pipeline_mode<synchronous>, transform_indices = @transform_7, window_bounds = array<i64: 1, 32>}, {pipeline_mode = #tpu.pipeline_mode<synchronous>, transform_indices = @transform_8, window_bounds = array<i64: 1, 32>}, {transform_indices = @transform_9, window_bounds = array<i64: 1, 8, 32>}]} {
    %c8_i32 = arith.constant 8 : i32
    %0 = arith.muli %arg1, %c8_i32 : i32
    %1 = tpu.assume_multiple %0, 8 : i32
    %c0_i32 = arith.constant 0 : i32
    %2 = arith.cmpi eq, %arg1, %c0_i32 : i32
    %3 = arith.extui %2 : i1 to i32
    %c0_i32_0 = arith.constant 0 : i32
    %4 = arith.cmpi ne, %3, %c0_i32_0 : i32
    scf.if %4 {
      %c0_41 = arith.constant 0 : index
      %c0_42 = arith.constant 0 : index
      %c0_43 = arith.constant 0 : index
      %118 = vector.load %arg2[%c0_41, %c0_42, %c0_43] : memref<1x8x32xf32, #tpu.memory_space<vmem>>, vector<1x8x32xf32>
      %119 = vector.shape_cast %118 : vector<1x8x32xf32> to vector<8x32xf32>
      %120 = arith.truncf %119 : vector<8x32xf32> to vector<8x32xbf16>
      %c0_44 = arith.constant 0 : index
      %c0_45 = arith.constant 0 : index
      %121 = vector.load %arg5[%c0_44, %c0_45] : memref<32x128xbf16, #tpu.memory_space<vmem>>, vector<32x128xbf16>
      %cst_46 = arith.constant dense<0.000000e+00> : vector<8x128xf32>
      %122 = tpu.matmul %120, %121, %cst_46 {dimension_numbers = #tpu.dot_dimension_numbers<[1], [0], [0], [1], [0, 0, 1, 1], [], []>} : vector<8x32xbf16>, vector<32x128xbf16>, vector<8x128xf32> -> vector<8x128xf32>
      %c0_47 = arith.constant 0 : index
      %c0_48 = arith.constant 0 : index
      %123 = vector.load %arg6[%c0_47, %c0_48] : memref<1x128xf32, #tpu.memory_space<vmem>>, vector<1x128xf32>
      %124 = vector.broadcast %123 : vector<1x128xf32> to vector<8x128xf32>
      %125 = arith.addf %122, %124 : vector<8x128xf32>
      %126 = arith.truncf %125 : vector<8x128xf32> to vector<8x128xbf16>
      %c0_49 = arith.constant 0 : index
      %c0_50 = arith.constant 0 : index
      %127 = vector.load %arg12[%c0_49, %c0_50] : memref<8x128xbf16, #tpu.memory_space<vmem>>, vector<8x128xbf16>
      tpu.vector_store %arg12[%c0_49, %c0_50], %126 {strides = array<i32>} : memref<8x128xbf16, #tpu.memory_space<vmem>>, vector<8x128xbf16>,
    } else {
    }
    %c0 = arith.constant 0 : index
    %5 = arith.index_cast %1 : i32 to index
    %c0_1 = arith.constant 0 : index
    %6 = vector.load %arg2[%c0, %5, %c0_1] : memref<1x8x32xf32, #tpu.memory_space<vmem>>, vector<1x8x32xf32>
    %7 = vector.shape_cast %6 : vector<1x8x32xf32> to vector<8x32xf32>
    %8 = arith.truncf %7 : vector<8x32xf32> to vector<8x32xbf16>
    %c0_2 = arith.constant 0 : index
    %c0_3 = arith.constant 0 : index
    %9 = vector.load %arg3[%c0_2, %c0_3] : memref<32x64xbf16, #tpu.memory_space<vmem>>, vector<32x64xbf16>
    %cst = arith.constant dense<0.000000e+00> : vector<8x64xf32>
    %10 = tpu.matmul %8, %9, %cst {dimension_numbers = #tpu.dot_dimension_numbers<[1], [0], [0], [1], [0, 0, 1, 1], [], []>} : vector<8x32xbf16>, vector<32x64xbf16>, vector<8x64xf32> -> vector<8x64xf32>
    %c0_4 = arith.constant 0 : index
    %c0_5 = arith.constant 0 : index
    %11 = vector.load %arg4[%c0_4, %c0_5] : memref<1x64xf32, #tpu.memory_space<vmem>>, vector<1x64xf32>
    %12 = vector.broadcast %11 : vector<1x64xf32> to vector<8x64xf32>
    %13 = arith.addf %10, %12 : vector<8x64xf32>
    %14 = arith.truncf %13 : vector<8x64xf32> to vector<8x64xbf16>
    %c0_6 = arith.constant 0 : index
    %c0_7 = arith.constant 0 : index
    %15 = vector.load %arg12[%c0_6, %c0_7] : memref<8x128xbf16, #tpu.memory_space<vmem>>, vector<8x128xbf16>
    %16 = vector.extract_strided_slice %14 {offsets = [0, 0], sizes = [8, 16], strides = [1, 1]} : vector<8x64xbf16> to vector<8x16xbf16>
    %17 = vector.extract_strided_slice %15 {offsets = [0, 0], sizes = [8, 16], strides = [1, 1]} : vector<8x128xbf16> to vector<8x16xbf16>
    %18 = vector.extract_strided_slice %15 {offsets = [0, 64], sizes = [8, 16], strides = [1, 1]} : vector<8x128xbf16> to vector<8x16xbf16>
    %cst_8 = arith.constant dense<0.000000e+00> : vector<8x8xf32>
    %19 = tpu.matmul %16, %17, %cst_8 {dimension_numbers = #tpu.dot_dimension_numbers<[1], [1], [0], [0], [0, 0, 1, 0], [], []>} : vector<8x16xbf16>, vector<8x16xbf16>, vector<8x8xf32> -> vector<8x8xf32>
    %cst_9 = arith.constant dense<0xFF800000> : vector<8xf32>
    %20 = vector.multi_reduction <maximumf>, %19, %cst_9 [1] : vector<8x8xf32> to vector<8xf32>
    %21 = vector.shape_cast %20 : vector<8xf32> to vector<8x1xf32>
    %22 = vector.broadcast %21 : vector<8x1xf32> to vector<8x8xf32>
    %23 = arith.subf %19, %22 : vector<8x8xf32>
    %24 = math.exp %23 : vector<8x8xf32>
    %cst_10 = arith.constant dense<0.000000e+00> : vector<8xf32>
    %25 = vector.multi_reduction <add>, %24, %cst_10 [1] : vector<8x8xf32> to vector<8xf32>
    %26 = vector.shape_cast %25 : vector<8xf32> to vector<8x1xf32>
    %27 = tpu.reciprocal %26 {approx = true} : vector<8x1xf32> -> vector<8x1xf32>
    %28 = vector.broadcast %27 : vector<8x1xf32> to vector<8x8xf32>
    %29 = arith.mulf %24, %28 : vector<8x8xf32>
    %30 = arith.truncf %29 : vector<8x8xf32> to vector<8x8xbf16>
    %cst_11 = arith.constant dense<0.000000e+00> : vector<8x16xf32>
    %31 = tpu.matmul %30, %18, %cst_11 {dimension_numbers = #tpu.dot_dimension_numbers<[1], [0], [0], [1], [0, 0, 1, 1], [], []>} : vector<8x8xbf16>, vector<8x16xbf16>, vector<8x16xf32> -> vector<8x16xf32>
    %32 = arith.truncf %31 : vector<8x16xf32> to vector<8x16xbf16>
    %33 = vector.extract_strided_slice %14 {offsets = [0, 16], sizes = [8, 16], strides = [1, 1]} : vector<8x64xbf16> to vector<8x16xbf16>
    %34 = vector.extract_strided_slice %15 {offsets = [0, 16], sizes = [8, 16], strides = [1, 1]} : vector<8x128xbf16> to vector<8x16xbf16>
    %35 = vector.extract_strided_slice %15 {offsets = [0, 80], sizes = [8, 16], strides = [1, 1]} : vector<8x128xbf16> to vector<8x16xbf16>
    %cst_12 = arith.constant dense<0.000000e+00> : vector<8x8xf32>
    %36 = tpu.matmul %33, %34, %cst_12 {dimension_numbers = #tpu.dot_dimension_numbers<[1], [1], [0], [0], [0, 0, 1, 0], [], []>} : vector<8x16xbf16>, vector<8x16xbf16>, vector<8x8xf32> -> vector<8x8xf32>
    %cst_13 = arith.constant dense<0xFF800000> : vector<8xf32>
    %37 = vector.multi_reduction <maximumf>, %36, %cst_13 [1] : vector<8x8xf32> to vector<8xf32>
    %38 = vector.shape_cast %37 : vector<8xf32> to vector<8x1xf32>
    %39 = vector.broadcast %38 : vector<8x1xf32> to vector<8x8xf32>
    %40 = arith.subf %36, %39 : vector<8x8xf32>
    %41 = math.exp %40 : vector<8x8xf32>
    %cst_14 = arith.constant dense<0.000000e+00> : vector<8xf32>
    %42 = vector.multi_reduction <add>, %41, %cst_14 [1] : vector<8x8xf32> to vector<8xf32>
    %43 = vector.shape_cast %42 : vector<8xf32> to vector<8x1xf32>
    %44 = tpu.reciprocal %43 {approx = true} : vector<8x1xf32> -> vector<8x1xf32>
    %45 = vector.broadcast %44 : vector<8x1xf32> to vector<8x8xf32>
    %46 = arith.mulf %41, %45 : vector<8x8xf32>
    %47 = arith.truncf %46 : vector<8x8xf32> to vector<8x8xbf16>
    %cst_15 = arith.constant dense<0.000000e+00> : vector<8x16xf32>
    %48 = tpu.matmul %47, %35, %cst_15 {dimension_numbers = #tpu.dot_dimension_numbers<[1], [0], [0], [1], [0, 0, 1, 1], [], []>} : vector<8x8xbf16>, vector<8x16xbf16>, vector<8x16xf32> -> vector<8x16xf32>
    %49 = arith.truncf %48 : vector<8x16xf32> to vector<8x16xbf16>
    %50 = vector.extract_strided_slice %14 {offsets = [0, 32], sizes = [8, 16], strides = [1, 1]} : vector<8x64xbf16> to vector<8x16xbf16>
    %51 = vector.extract_strided_slice %15 {offsets = [0, 32], sizes = [8, 16], strides = [1, 1]} : vector<8x128xbf16> to vector<8x16xbf16>
    %52 = vector.extract_strided_slice %15 {offsets = [0, 96], sizes = [8, 16], strides = [1, 1]} : vector<8x128xbf16> to vector<8x16xbf16>
    %cst_16 = arith.constant dense<0.000000e+00> : vector<8x8xf32>
    %53 = tpu.matmul %50, %51, %cst_16 {dimension_numbers = #tpu.dot_dimension_numbers<[1], [1], [0], [0], [0, 0, 1, 0], [], []>} : vector<8x16xbf16>, vector<8x16xbf16>, vector<8x8xf32> -> vector<8x8xf32>
    %cst_17 = arith.constant dense<0xFF800000> : vector<8xf32>
    %54 = vector.multi_reduction <maximumf>, %53, %cst_17 [1] : vector<8x8xf32> to vector<8xf32>
    %55 = vector.shape_cast %54 : vector<8xf32> to vector<8x1xf32>
    %56 = vector.broadcast %55 : vector<8x1xf32> to vector<8x8xf32>
    %57 = arith.subf %53, %56 : vector<8x8xf32>
    %58 = math.exp %57 : vector<8x8xf32>
    %cst_18 = arith.constant dense<0.000000e+00> : vector<8xf32>
    %59 = vector.multi_reduction <add>, %58, %cst_18 [1] : vector<8x8xf32> to vector<8xf32>
    %60 = vector.shape_cast %59 : vector<8xf32> to vector<8x1xf32>
    %61 = tpu.reciprocal %60 {approx = true} : vector<8x1xf32> -> vector<8x1xf32>
    %62 = vector.broadcast %61 : vector<8x1xf32> to vector<8x8xf32>
    %63 = arith.mulf %58, %62 : vector<8x8xf32>
    %64 = arith.truncf %63 : vector<8x8xf32> to vector<8x8xbf16>
    %cst_19 = arith.constant dense<0.000000e+00> : vector<8x16xf32>
    %65 = tpu.matmul %64, %52, %cst_19 {dimension_numbers = #tpu.dot_dimension_numbers<[1], [0], [0], [1], [0, 0, 1, 1], [], []>} : vector<8x8xbf16>, vector<8x16xbf16>, vector<8x16xf32> -> vector<8x16xf32>
    %66 = arith.truncf %65 : vector<8x16xf32> to vector<8x16xbf16>
    %67 = vector.extract_strided_slice %14 {offsets = [0, 48], sizes = [8, 16], strides = [1, 1]} : vector<8x64xbf16> to vector<8x16xbf16>
    %68 = vector.extract_strided_slice %15 {offsets = [0, 48], sizes = [8, 16], strides = [1, 1]} : vector<8x128xbf16> to vector<8x16xbf16>
    %69 = vector.extract_strided_slice %15 {offsets = [0, 112], sizes = [8, 16], strides = [1, 1]} : vector<8x128xbf16> to vector<8x16xbf16>
    %cst_20 = arith.constant dense<0.000000e+00> : vector<8x8xf32>
    %70 = tpu.matmul %67, %68, %cst_20 {dimension_numbers = #tpu.dot_dimension_numbers<[1], [1], [0], [0], [0, 0, 1, 0], [], []>} : vector<8x16xbf16>, vector<8x16xbf16>, vector<8x8xf32> -> vector<8x8xf32>
    %cst_21 = arith.constant dense<0xFF800000> : vector<8xf32>
    %71 = vector.multi_reduction <maximumf>, %70, %cst_21 [1] : vector<8x8xf32> to vector<8xf32>
    %72 = vector.shape_cast %71 : vector<8xf32> to vector<8x1xf32>
    %73 = vector.broadcast %72 : vector<8x1xf32> to vector<8x8xf32>
    %74 = arith.subf %70, %73 : vector<8x8xf32>
    %75 = math.exp %74 : vector<8x8xf32>
    %cst_22 = arith.constant dense<0.000000e+00> : vector<8xf32>
    %76 = vector.multi_reduction <add>, %75, %cst_22 [1] : vector<8x8xf32> to vector<8xf32>
    %77 = vector.shape_cast %76 : vector<8xf32> to vector<8x1xf32>
    %78 = tpu.reciprocal %77 {approx = true} : vector<8x1xf32> -> vector<8x1xf32>
    %79 = vector.broadcast %78 : vector<8x1xf32> to vector<8x8xf32>
    %80 = arith.mulf %75, %79 : vector<8x8xf32>
    %81 = arith.truncf %80 : vector<8x8xf32> to vector<8x8xbf16>
    %cst_23 = arith.constant dense<0.000000e+00> : vector<8x16xf32>
    %82 = tpu.matmul %81, %69, %cst_23 {dimension_numbers = #tpu.dot_dimension_numbers<[1], [0], [0], [1], [0, 0, 1, 1], [], []>} : vector<8x8xbf16>, vector<8x16xbf16>, vector<8x16xf32> -> vector<8x16xf32>
    %83 = arith.truncf %82 : vector<8x16xf32> to vector<8x16xbf16>
    %84 = tpu.concatenate %32, %49, %66, %83 in 1 : vector<8x16xbf16>, vector<8x16xbf16>, vector<8x16xbf16>, vector<8x16xbf16> -> vector<8x64xbf16>
    %c0_24 = arith.constant 0 : index
    %c0_25 = arith.constant 0 : index
    %85 = vector.load %arg7[%c0_24, %c0_25] : memref<64x32xbf16, #tpu.memory_space<vmem>>, vector<64x32xbf16>
    %cst_26 = arith.constant dense<0.000000e+00> : vector<8x32xf32>
    %86 = tpu.matmul %84, %85, %cst_26 {dimension_numbers = #tpu.dot_dimension_numbers<[1], [0], [0], [1], [0, 0, 1, 1], [], []>} : vector<8x64xbf16>, vector<64x32xbf16>, vector<8x32xf32> -> vector<8x32xf32>
    %c0_27 = arith.constant 0 : index
    %c0_28 = arith.constant 0 : index
    %87 = vector.load %arg8[%c0_27, %c0_28] : memref<1x32xf32, #tpu.memory_space<vmem>>, vector<1x32xf32>
    %88 = vector.broadcast %87 : vector<1x32xf32> to vector<8x32xf32>
    %89 = arith.addf %86, %88 : vector<8x32xf32>
    %90 = arith.addf %7, %89 : vector<8x32xf32>
    %cst_29 = arith.constant dense<0.000000e+00> : vector<8xf32>
    %91 = vector.multi_reduction <add>, %90, %cst_29 [1] : vector<8x32xf32> to vector<8xf32>
    %92 = vector.shape_cast %91 : vector<8xf32> to vector<8x1xf32>
    %cst_30 = arith.constant 3.200000e+01 : f32
    %93 = vector.broadcast %cst_30 : f32 to vector<8x1xf32>
    %94 = arith.divf %92, %93 : vector<8x1xf32>
    %95 = vector.broadcast %94 : vector<8x1xf32> to vector<8x32xf32>
    %96 = arith.subf %90, %95 : vector<8x32xf32>
    %97 = arith.mulf %96, %96 : vector<8x32xf32>
    %cst_31 = arith.constant dense<0.000000e+00> : vector<8xf32>
    %98 = vector.multi_reduction <add>, %97, %cst_31 [1] : vector<8x32xf32> to vector<8xf32>
    %99 = vector.shape_cast %98 : vector<8xf32> to vector<8x1xf32>
    %cst_32 = arith.constant 3.200000e+01 : f32
    %100 = vector.broadcast %cst_32 : f32 to vector<8x1xf32>
    %101 = arith.divf %99, %100 : vector<8x1xf32>
    %102 = vector.broadcast %94 : vector<8x1xf32> to vector<8x32xf32>
    %103 = arith.subf %90, %102 : vector<8x32xf32>
    %cst_33 = arith.constant 9.99999974E-6 : f32
    %104 = vector.broadcast %cst_33 : f32 to vector<8x1xf32>
    %105 = arith.addf %101, %104 : vector<8x1xf32>
    %106 = math.rsqrt %105 : vector<8x1xf32>
    %107 = vector.broadcast %106 : vector<8x1xf32> to vector<8x32xf32>
    %108 = arith.mulf %103, %107 : vector<8x32xf32>
    %c0_34 = arith.constant 0 : index
    %c0_35 = arith.constant 0 : index
    %109 = vector.load %arg9[%c0_34, %c0_35] : memref<1x32xf32, #tpu.memory_space<vmem>>, vector<1x32xf32>
    %110 = vector.broadcast %109 : vector<1x32xf32> to vector<8x32xf32>
    %111 = arith.mulf %108, %110 : vector<8x32xf32>
    %c0_36 = arith.constant 0 : index
    %c0_37 = arith.constant 0 : index
    %112 = vector.load %arg10[%c0_36, %c0_37] : memref<1x32xf32, #tpu.memory_space<vmem>>, vector<1x32xf32>
    %113 = vector.broadcast %112 : vector<1x32xf32> to vector<8x32xf32>
    %114 = arith.addf %111, %113 : vector<8x32xf32>
    %c0_38 = arith.constant 0 : index
    %c0_39 = arith.constant 0 : index
    %c0_40 = arith.constant 0 : index
    %115 = vector.load %arg11[%c0_38, %c0_39, %c0_40] : memref<1x8x32xf32, #tpu.memory_space<vmem>>, vector<1x8x32xf32>
    %116 = vector.shape_cast %115 : vector<1x8x32xf32> to vector<8x32xf32>
    %117 = vector.shape_cast %114 : vector<8x32xf32> to vector<1x8x32xf32>
    tpu.vector_store %arg11[%c0_38, %c0_39, %c0_40], %117 {strides = array<i32>} : memref<1x8x32xf32, #tpu.memory_space<vmem>>, vector<1x8x32xf32>,
    return
  }
  func.func @transform_0(%arg0: i32, %arg1: i32) -> (i32, i32, i32) {
    %c0_i32 = arith.constant 0 : i32
    %c0_i32_0 = arith.constant 0 : i32
    %c0_i32_1 = arith.constant 0 : i32
    return %arg0, %c0_i32, %c0_i32_0 : i32, i32, i32
  }
  func.func @transform_1(%arg0: i32, %arg1: i32) -> (i32, i32) {
    %c0_i32 = arith.constant 0 : i32
    %c0_i32_0 = arith.constant 0 : i32
    %c0_i32_1 = arith.constant 0 : i32
    return %c0_i32, %c0_i32_0 : i32, i32
  }
  func.func @transform_2(%arg0: i32, %arg1: i32) -> (i32, i32) {
    %c0_i32 = arith.constant 0 : i32
    %c0_i32_0 = arith.constant 0 : i32
    %c0_i32_1 = arith.constant 0 : i32
    return %c0_i32, %c0_i32_0 : i32, i32
  }
  func.func @transform_3(%arg0: i32, %arg1: i32) -> (i32, i32) {
    %c0_i32 = arith.constant 0 : i32
    %c0_i32_0 = arith.constant 0 : i32
    %c0_i32_1 = arith.constant 0 : i32
    return %c0_i32, %c0_i32_0 : i32, i32
  }
  func.func @transform_4(%arg0: i32, %arg1: i32) -> (i32, i32) {
    %c0_i32 = arith.constant 0 : i32
    %c0_i32_0 = arith.constant 0 : i32
    %c0_i32_1 = arith.constant 0 : i32
    return %c0_i32, %c0_i32_0 : i32, i32
  }
  func.func @transform_5(%arg0: i32, %arg1: i32) -> (i32, i32) {
    %c0_i32 = arith.constant 0 : i32
    %c0_i32_0 = arith.constant 0 : i32
    %c0_i32_1 = arith.constant 0 : i32
    return %c0_i32, %c0_i32_0 : i32, i32
  }
  func.func @transform_6(%arg0: i32, %arg1: i32) -> (i32, i32) {
    %c0_i32 = arith.constant 0 : i32
    %c0_i32_0 = arith.constant 0 : i32
    %c0_i32_1 = arith.constant 0 : i32
    return %c0_i32, %c0_i32_0 : i32, i32
  }
  func.func @transform_7(%arg0: i32, %arg1: i32) -> (i32, i32) {
    %c0_i32 = arith.constant 0 : i32
    %c0_i32_0 = arith.constant 0 : i32
    %c0_i32_1 = arith.constant 0 : i32
    return %c0_i32, %c0_i32_0 : i32, i32
  }
  func.func @transform_8(%arg0: i32, %arg1: i32) -> (i32, i32) {
    %c0_i32 = arith.constant 0 : i32
    %c0_i32_0 = arith.constant 0 : i32
    %c0_i32_1 = arith.constant 0 : i32
    return %c0_i32, %c0_i32_0 : i32, i32
  }
  func.func @transform_9(%arg0: i32, %arg1: i32) -> (i32, i32, i32) {
    %c0_i32 = arith.constant 0 : i32
    %c0_i32_0 = arith.constant 0 : i32
    return %arg0, %arg1, %c0_i32 : i32, i32, i32
  }
}

</mosaic_0001>

<bundles_post_ra>
// kernel: tpu_custom_call.1
= control target key start
LH: loop header
LB: loop body
LE: loop exit
PB: predicated region body
PF: predicated region fallthrough
CT: control target
= control target key end

     0   :  { %s1764_s0 = inlined_call_operand.vmem [shape: f32[2,8,32], index: 0, kind: input, shape index: {}]   ;;  %s1765_s1 = inlined_call_operand.vmem [shape: bf16[32,64], index: 1, kind: input, shape index: {}]   ;;  %s1766_s2 = inlined_call_operand.vmem [shape: f32[1,64], index: 2, kind: input, shape index: {}]   ;;  %s1767_s3 = inlined_call_operand.vmem [shape: bf16[32,128], index: 3, kind: input, shape index: {}]   ;;  %s1768_s4 = inlined_call_operand.vmem [shape: f32[1,128], index: 4, kind: input, shape index: {}]   ;;  %s1769_s5 = inlined_call_operand.vmem [shape: bf16[64,32], index: 5, kind: input, shape index: {}]   ;;  %s1770_s6 = inlined_call_operand.vmem [shape: f32[1,32], index: 6, kind: input, shape index: {}]   ;;  %s1771_s7 = inlined_call_operand.vmem [shape: f32[1,32], index: 7, kind: input, shape index: {}]   ;;  %s1772_s8 = inlined_call_operand.vmem [shape: f32[1,32], index: 8, kind: input, shape index: {}]   ;;  %s1773_s9 = inlined_call_operand.hbm [shape: f32[2,8,32], index: 9, kind: output, shape index: {}]  }
   0x1   :  { %1774 = sst [smem:[#allocation6_spill]] %s1764_s0 }
   0x2   :  { %14 = vsyncpa [#allocation4], 0 }
   0x3   :  { %16 = vsyncpa [#allocation4 + $0x1], 0  ;;  %s1524_s30 = smov 0   ;;  %s1526_s10 = smov 0  }
   0x4   :  { %s1528_s11 = smov 0   ;;  %s1530_s12 = smov 0  }
   0x5   :  { %s1532_s13 = smov 0   ;;  %s1534_s14 = smov 0  }
   0x6 LB: > { %s1154_s15 = sadd.s32 4294967295, %s1462_s14   ;;  %s1155_s16 = sadd.s32 4294967294, %s1462_s14   ;;  %s1462_s14 = sphi %s1534_s14, %s22_s14   ;;  %s1458_s13 = sphi %s1532_s13, %s1782_s13   ;;  %s1454_s12 = sphi %s1530_s12, %s1781_s12   ;;  %s1450_s11 = sphi %s1528_s11, %s1780_s11   ;;  %s1446_s10 = sphi %s1526_s10, %s1779_s10   ;;  %s1442_s30 = sphi %s1524_s30, %s1778_s30  }
   0x7   : > { %s34_s17 = sadd.s32 1, %s1458_s13  ;;  %s237_s18 = sadd.s32 1, %s1450_s11 }
   0x8   : > { %p36_p0 = scmp.ge.s32.totalorder %s34_s17, 2  ;;  %p247_p1 = scmp.ne.s32.totalorder %s1450_s11, %s1446_s10 }
   0x9   : > { %p248_p2 = scmp.eq.s32.totalorder %s1154_s15, 1  ;;  %p253_p3 = scmp.ne.s32.totalorder %s1446_s10, %s1442_s30 }
   0xa   : > { %s1784_s17 = smov (%p36_p0, %s34_s17), 0  ;;  %p254_p5 = scmp.eq.s32.totalorder %s1155_s16, 1 }
   0xb   : > { %p1564_p4 = por %p248_p2, %p247_p1  ;;  %s232_s20 = ssub.s32 %s1458_s13, %s1784_s17 }
   0xc   : > { %p1158_p6 = scmp.ge.s32.totalorder %s1462_s14, 1  ;;  %p235_p7 = scmp.eq.s32.totalorder %s232_s20, 0 }
   0xd   : > { %p1571_p8 = por %p254_p5, %p253_p3  ;;  %p303_p9 = scmp.lt.s32.totalorder %s1462_s14, 3 }
   0xe   : > { %s1577_s22 = scalar_select %p235_p7, %s1450_s11, %s237_s18  }
   0xf   : > { %p304_p10 = pnand %p1158_p6, %p303_p9 }
  0x10   : > { %v1357_v0 = vld [vmem:[%s1767_s3] sm:$0xff] (!%p304_p10)   ;;  %v1464_v1 = vmov (!%p304_p10), 0.0   ;;  %v1358_v2 = vld [vmem:[%s1767_s3 + $0x8] sm:$0xff] (!%p304_p10)   ;;  %vm1465_vm0 = vmmov (!%p304_p10), 0   ;;  %p338_p11 = scmp.lt.s32.totalorder (!%p304_p10), %s1454_s12, 1  ;;  %s1777_s0 = sld [smem:[#allocation6_spill]] (!%p304_p10) }
  0x11   : > { %307 = sbr.rel (%p304_p10) target bundleno = 1806 (0x70e), region = 56  ;;  %1217 = vmatprep.subr.bf16.mxu1 (!%p304_p10), %v1464_v1  ;;  %1233 = vmatprep.subr.bf16.mxu0 (!%p304_p10), %v1464_v1  ;;  %vm373_vm1 = vcmask (!%p304_p10), 261120   ;;  %v1359_v4 = vld [vmem:[%s1765_s1] sm:$0xff] (!%p304_p10)   ;;  %v1360_v6 = vld [vmem:[%s1765_s1 + $0x8] sm:$0xff] (!%p304_p10)   ;;  %vm491_vm2 = vcmask (!%p304_p10), 130048   ;;  %s1466_s29 = smov (!%p304_p10), 96  }
  0x12   : > { %1218 = vmatpush3.bf16.msra.mxu1 (!%p304_p10), %v1357_v0  ;;  %1221 = vmatprep.mubr.msk.bf16.mxu1 (!%p304_p10), %vm1465_vm0, %v1464_v1  ;;  %v1161_v7 = vld [vmem:[%s1768_s4] ss:$0 sm:$0xff] (!%p304_p10)  ;;  %s1467_s15 = smov (!%p304_p10), 112   ;;  %vm538_vm3 = vcmask (!%p304_p10), 64512   ;;  %s1469_s18 = smov (!%p304_p10), 64   ;;  %vm559_vm4 = vcmask (!%p304_p10), 1043456  }
  0x13   : > { %1219 = vmatprep.subr.bf16.mxu1 (!%p304_p10), %v1464_v1  ;;  %1235 = vmatprep.mubr.msk.bf16.mxu0 (!%p304_p10), %vm1465_vm0, %v1464_v1  ;;  %v1165_v14 = vld [vmem:[%s1766_s2] ss:$0 sm:$0xff] (!%p304_p10)  ;;  %s1470_s20 = smov (!%p304_p10), 32   ;;  %s1471_s23 = smov (!%p304_p10), 16   ;;  %vm952_vm5 = vcmask (!%p304_p10), 392192   ;;  %vm994_vm6 = vcmask (!%p304_p10), 523264  }
  0x14   : > { %s1472_s24 = smov (!%p304_p10), 48  }
  0x16   : > { %1220 = vmatpush3.bf16.msra.mxu1 (!%p304_p10), %v1358_v2 }
  0x17   : > { %1225 = vmatprep.subr.bf16.mxu1 (!%p304_p10), %v1464_v1 }
  0x18   : > { %s339_s27 = scalar_select %p338_p11, %s1454_s12, 1 }
  0x1a   : > { %s1160_s28 = sshll.u32 %s339_s27, 3 }
  0x1b   : > { %s341_s16 = scalar_lea.vmem %s1777_s0, %s1160_s28 }
  0x1c   : > { %v1598_v3 = vld [vmem:[%s341_s16] sm:$0xff]  ;;  %s1468_s16 = smov 80  }
  0x1d   : > { %v349_v5 = vpack.c.bf16 %v1598_v3, %v1598_v3 }
  0x1f   : > { %1222 = vmatmul.mubr.msk.bf16.vlgmr.msra.gmra.mrb[0].mxu1 %vm373_vm1, %v349_v5 }
  0x20   : > { %1226 = vmatpush3.bf16.msra.mxu1 %v1359_v4  ;;  %1229 = vmatprep.mubr.msk.bf16.mxu1 %vm1465_vm0, %v1464_v1 }
  0x21   : > { %1227 = vmatprep.subr.bf16.mxu1 %v1464_v1 }
  0x24   : > { %1228 = vmatpush3.bf16.msra.mxu1 %v1360_v6 }
  0x25   : > { %1239 = vmatprep.subr.bf16.mxu1 %v1464_v1 }
  0x27   : > { %1230 = vmatmul.mubr.msk.bf16.vlgmr.msra.gmra.mrb[4].mxu1 %vm373_vm1, %v349_v5 }
  0x28   : > { %1241 = vmatprep.mubr.msk.bf16.mxu1 %vm1465_vm0, %v1464_v1 }
  0xf2   : > { %v411_v8 = vpop.f32.mrb[0].mxu1 }
  0xf3   : > { %v412_v9 = vadd.f32 %v1161_v7, %v411_v8  ;;  %v1223_v10 = vpop.f32.mrb[1].mxu1 }
  0xf4   : > { %v414_v11 = vpop.f32.mrb[2].mxu1 }
  0xf5   : > { %v417_v12 = vpack.c.bf16 %v412_v9, %v412_v9  ;;  %v1224_v13 = vpop.f32.mrb[3].mxu1 }
  0xf7   : > { %418 = vst [vmem:[#allocation2] sm:$0xf] %v417_v12 }
  0xfa   : > { %v483_v15 = vpop.f32.mrb[4].mxu1 }
  0xfb   : > { %v1231_v16 = vpop.f32.mrb[5].mxu1  ;;  %v484_v18 = vadd.f32 %v1165_v14, %v483_v15 }
  0xfc   : > { %v486_v17 = vpop.f32.mrb[6].mxu1 }
  0xfd   : > { %v1232_v19 = vpop.f32.mrb[7].mxu1  ;;  %v489_v23 = vpack.c.bf16 %v484_v18, %v484_v18 }
  0xfe   : > { %v490_v20 = vld [vmem:[#allocation2] sm:$0xf] }
  0xff   : > { %v496_v21 = vsel %vm491_vm2, %v490_v20, 0  ;;  %v1623_v22 = vcombine.low %v490_v20, %v490_v20 }
 0x100   : > { %1234 = vmatpush3.bf16.xpose.msra.mxu0 %v496_v21 }
 0x101   : > { %718 = vrot.lane.b32.xlu1 %v1623_v22, %s1466_s29  ;;  %607 = vrot.lane.b32.xlu0 %v1623_v22, %s1467_s15 }
 0x102   : > { %1245 = vmatprep.subr.bf16.mxu0 %v1464_v1 }
 0x105   : > { %716 = vrot.lane.b32.xlu1 %v489_v23, %s1466_s29  ;;  %605 = vrot.lane.b32.xlu0 %v489_v23, %s1467_s15  ;;  %s1187_s15 = sshll.u32 %s1454_s12, 7  ;;  %s1473_s12 = smov [#allocation3]  }
 0x106   : > { %s1716_s0 = scalar_lea.hbm %s1773_s9, %s1187_s15 }
 0x107   : > { %1236 = vmatmul.mubr.msk.bf16.vlgmr.msra.gmra.mrb[0].mxu0 %vm491_vm2, %v489_v23 }
 0x108   : > { %1247 = vmatprep.mubr.msk.bf16.mxu0 %vm1465_vm0, %v1464_v1 }
 0x109   : > { %827 = vrot.lane.b32.xlu1 %v489_v23, %s1468_s16  ;;  %829 = vrot.lane.b32.xlu0 %v1623_v22, %s1468_s16 }
 0x173   : > { %v608_v24 = vpop.permute.xlu0 %607  ;;  %v719_v26 = vpop.permute.xlu1 %718 }
 0x174   : > { %v613_v25 = vsel %vm491_vm2, %v608_v24, 0  ;;  %v724_v28 = vsel %vm491_vm2, %v719_v26, 0 }
 0x175   : > { %1246 = vmatpush3.bf16.xpose.msra.mxu0 %v613_v25 }
 0x176   : > { %1257 = vmatprep.subr.bf16.mxu0 %v1464_v1 }
 0x177   : > { %v606_v27 = vpop.permute.xlu0 %605  ;;  %v717_v30 = vpop.permute.xlu1 %716 }
 0x17b   : > { %v830_v29 = vpop.permute.xlu0 %829  ;;  %v828_v32 = vpop.permute.xlu1 %827 }
 0x17c   : > { %1248 = vmatmul.mubr.msk.bf16.vlgmr.msra.gmra.mrb[4].mxu0 %vm491_vm2, %v606_v27  ;;  %v835_v31 = vsel %vm491_vm2, %v830_v29, 0 }
 0x17d   : > { %1258 = vmatpush3.bf16.xpose.msra.mxu0 %v724_v28  ;;  %1259 = vmatprep.mubr.msk.bf16.mxu0 %vm1465_vm0, %v1464_v1 }
 0x17e   : > { %1269 = vmatprep.subr.bf16.mxu0 %v1464_v1 }
 0x184   : > { %1260 = vmatmul.mubr.msk.bf16.vlgmr.msra.gmra.mrb[8].mxu0 %vm491_vm2, %v717_v30 }
 0x185   : > { %1270 = vmatpush3.bf16.xpose.msra.mxu0 %v835_v31  ;;  %1271 = vmatprep.mubr.msk.bf16.mxu0 %vm1465_vm0, %v1464_v1 }
 0x186   : > { %1281 = vmatprep.subr.bf16.mxu0 %v1464_v1 }
 0x18c   : > { %1272 = vmatmul.mubr.msk.bf16.vlgmr.msra.gmra.mrb[12].mxu0 %vm491_vm2, %v828_v32 }
 0x18d   : > { %1289 = vmatprep.mubr.msk.bf16.mxu0 %vm1465_vm0, %v1464_v1 }
 0x1da   : > { %v532_v33 = vpop.f32.mrb[0].mxu0 }
 0x1db   : > { %v1237_v34 = vpop.f32.mrb[1].mxu0  ;;  %v539_v35 = vsel %vm538_vm3, %v532_v33, -inf }
 0x1dc   : > { %540 = vmax.xlane.f32.xlu0 %v539_v35  ;;  %v535_v36 = vpop.f32.mrb[2].mxu0 }
 0x1dd   : > { %v1238_v37 = vpop.f32.mrb[3].mxu0 }
 0x24f   : > { %v649_v38 = vpop.f32.mrb[4].mxu0 }
 0x250   : > { %v1249_v39 = vpop.f32.mrb[5].mxu0  ;;  %v655_v40 = vsel %vm538_vm3, %v649_v38, -inf }
 0x251   : > { %656 = vmax.xlane.f32.xlu1 %v655_v40  ;;  %v652_v41 = vpop.f32.mrb[6].mxu0  ;;  %v1362_v39 = vld [vmem:[%s1769_s5] sm:$0xff]   ;;  %v1363_v40 = vld [vmem:[%s1769_s5 + $0x8] sm:$0xff]  }
 0x252   : > { %v1250_v42 = vpop.f32.mrb[7].mxu0  ;;  %1282 = vmatpush3.bf16.msra.mxu0 %v1362_v39  ;;  %v1364_v41 = vld [vmem:[%s1769_s5 + $0x10] sm:$0xff]  }
 0x253   : > { %1283 = vmatprep.subr.bf16.mxu0 %v1464_v1 }
 0x256   : > { %1284 = vmatpush3.bf16.msra.mxu0 %v1363_v40 }
 0x257   : > { %v760_v43 = vpop.f32.mrb[8].mxu0  ;;  %1285 = vmatprep.subr.bf16.mxu0 %v1464_v1 }
 0x258   : > { %v1261_v44 = vpop.f32.mrb[9].mxu0  ;;  %v766_v45 = vsel %vm538_vm3, %v760_v43, -inf }
 0x259   : > { %767 = vmax.xlane.f32.xlu0 %v766_v45  ;;  %v763_v46 = vpop.f32.mrb[10].mxu0 }
 0x25a   : > { %v1262_v47 = vpop.f32.mrb[11].mxu0  ;;  %1286 = vmatpush3.bf16.msra.mxu0 %v1364_v41 }
 0x25b   : > { %1287 = vmatprep.subr.bf16.mxu0 %v1464_v1 }
 0x25f   : > { %v871_v48 = vpop.f32.mrb[12].mxu0 }
 0x260   : > { %v1273_v49 = vpop.f32.mrb[13].mxu0  ;;  %v877_v50 = vsel %vm538_vm3, %v871_v48, -inf }
 0x261   : > { %878 = vmax.xlane.f32.xlu0 %v877_v50  ;;  %v874_v51 = vpop.f32.mrb[14].mxu0 }
 0x262   : > { %v1274_v52 = vpop.f32.mrb[15].mxu0 }
 0x269   : > { %v541_v53 = vpop.xlane.xlu0 %540 }
 0x26a   : > { %v542_v54 = vsub.f32 %v532_v33, %v541_v53 }
 0x26c   : > { %v543_v55 = vmul.f32 1.442695, %v542_v54 }
 0x26e   : > { %1366 = vpow2.f32 %v543_v55 }
 0x278   : > { %v1367_v56 = vpop.eup %1366 }
 0x279   : > { %v545_v57 = vsel %vm538_vm3, %v1367_v56, 0.0 }
 0x27a   : > { %546 = vadd.xlane.f32.xlu1 %v545_v57 }
 0x28b   : > { %554 = vrot.lane.b32.xlu1 %v1623_v22, %s1469_s18 }
 0x2de   : > { %v657_v58 = vpop.xlane.xlu1 %656 }
 0x2df   : > { %v658_v59 = vsub.f32 %v649_v38, %v657_v58 }
 0x2e1   : > { %v659_v60 = vmul.f32 1.442695, %v658_v59 }
 0x2e3   : > { %1368 = vpow2.f32 %v659_v60 }
 0x2e6   : > { %v768_v61 = vpop.xlane.xlu0 %767 }
 0x2e7   : > { %v769_v62 = vsub.f32 %v760_v43, %v768_v61  ;;  %v1365_v43 = vld [vmem:[%s1769_s5 + $0x18] sm:$0xff]  }
 0x2e8   : > { %1288 = vmatpush3.bf16.msra.mxu0 %v1365_v43 }
 0x2e9   : > { %v770_v63 = vmul.f32 1.442695, %v769_v62 }
 0x2eb   : > { %1370 = vpow2.f32 %v770_v63 }
 0x2ed   : > { %v1369_v0 = vpop.eup %1368 }
 0x2ee   : > { %v879_v2 = vpop.xlane.xlu0 %878  ;;  %v661_v4 = vsel %vm538_vm3, %v1369_v0, 0.0 }
 0x2ef   : > { %v880_v5 = vsub.f32 %v871_v48, %v879_v2  ;;  %662 = vadd.xlane.f32.xlu0 %v661_v4 }
 0x2f1   : > { %v881_v6 = vmul.f32 1.442695, %v880_v5 }
 0x2f3   : > { %1372 = vpow2.f32 %v881_v6 }
 0x2f5   : > { %v1371_v7 = vpop.eup %1370 }
 0x2f6   : > { %v772_v8 = vsel %vm538_vm3, %v1371_v7, 0.0 }
 0x2f7   : > { %773 = vadd.xlane.f32.xlu1 %v772_v8 }
 0x2fd   : > { %v1373_v9 = vpop.eup %1372 }
 0x2fe   : > { %v883_v10 = vsel %vm538_vm3, %v1373_v9, 0.0 }
 0x2ff   : > { %884 = vadd.xlane.f32.xlu0 %v883_v10 }
 0x307   : > { %v547_v11 = vpop.xlane.xlu1 %546 }
 0x308   : > { %1374 = vrcp.f32 %v547_v11  ;;  %778 = vrot.lane.b32.xlu1 %v1623_v22, %s1470_s20 }
 0x30b   : > { %v555_v12 = vpop.permute.xlu1 %554 }
 0x30c   : > { %v561_v13 = vsel %vm559_vm4, %v555_v12, 0  ;;  %889 = vrot.lane.b32.xlu1 %v1623_v22, %s1471_s23 }
 0x30d   : > { %1240 = vmatpush3.bf16.msra.mxu1 %v561_v13 }
 0x30e   : > { %1251 = vmatprep.subr.bf16.mxu1 %v1464_v1 }
 0x312   : > { %v1375_v14 = vpop.eup %1374 }
 0x313   : > { %v549_v15 = vmul.f32 %v1375_v14, %v1367_v56 }
 0x315   : > { %667 = vrot.lane.b32.xlu0 %v1623_v22, %s1472_s24  ;;  %v550_v16 = vpack.c.bf16 %v549_v15, %v549_v15 }
 0x317   : > { %1242 = vmatmul.mubr.msk.bf16.vlgmr.msra.gmra.mrb[8].mxu1 %vm538_vm3, %v550_v16 }
 0x318   : > { %1253 = vmatprep.mubr.msk.bf16.mxu1 %vm1465_vm0, %v1464_v1 }
 0x37c   : > { %v663_v17 = vpop.xlane.xlu0 %662 }
 0x37d   : > { %1376 = vrcp.f32 %v663_v17 }
 0x384   : > { %v774_v18 = vpop.xlane.xlu1 %773 }
 0x385   : > { %1378 = vrcp.f32 %v774_v18 }
 0x387   : > { %v1377_v19 = vpop.eup %1376 }
 0x388   : > { %v665_v21 = vmul.f32 %v1377_v19, %v1369_v0  ;;  %v779_v25 = vpop.permute.xlu1 %778  ;;  %v1178_v0 = vld [vmem:[%s1770_s6] ss:$0 sm:$0xff] }
 0x389   : > { %v784_v27 = vsel %vm559_vm4, %v779_v25, 0 }
 0x38a   : > { %v666_v22 = vpack.c.bf16 %v665_v21, %v665_v21 }
 0x38c   : > { %v885_v20 = vpop.xlane.xlu0 %884  ;;  %v890_v29 = vpop.permute.xlu1 %889 }
 0x38d   : > { %1380 = vrcp.f32 %v885_v20  ;;  %v895_v32 = vsel %vm559_vm4, %v890_v29, 0  ;;  %v1185_v20 = vld [vmem:[%s1772_s8] ss:$0 sm:$0xff] }
 0x38f   : > { %v1379_v26 = vpop.eup %1378 }
 0x390   : > { %v668_v23 = vpop.permute.xlu0 %667  ;;  %v776_v28 = vmul.f32 %v1379_v26, %v1371_v7 }
 0x391   : > { %v673_v24 = vsel %vm559_vm4, %v668_v23, 0 }
 0x392   : > { %1252 = vmatpush3.bf16.msra.mxu1 %v673_v24  ;;  %v777_v30 = vpack.c.bf16 %v776_v28, %v776_v28 }
 0x393   : > { %1263 = vmatprep.subr.bf16.mxu1 %v1464_v1 }
 0x395   : > { %1254 = vmatmul.mubr.msk.bf16.vlgmr.msra.gmra.mrb[12].mxu1 %vm538_vm3, %v666_v22 }
 0x396   : > { %1264 = vmatpush3.bf16.msra.mxu1 %v784_v27  ;;  %1265 = vmatprep.mubr.msk.bf16.mxu1 %vm1465_vm0, %v1464_v1 }
 0x397   : > { %1275 = vmatprep.subr.bf16.mxu1 %v1464_v1  ;;  %v1381_v31 = vpop.eup %1380 }
 0x398   : > { %v887_v33 = vmul.f32 %v1381_v31, %v1373_v9 }
 0x39a   : > { %v888_v34 = vpack.c.bf16 %v887_v33, %v887_v33 }
 0x39d   : > { %1266 = vmatmul.mubr.msk.bf16.vlgmr.msra.gmra.mrb[16].mxu1 %vm538_vm3, %v777_v30 }
 0x39e   : > { %1276 = vmatpush3.bf16.msra.mxu1 %v895_v32  ;;  %1277 = vmatprep.mubr.msk.bf16.mxu1 %vm1465_vm0, %v1464_v1 }
 0x3a5   : > { %1278 = vmatmul.mubr.msk.bf16.vlgmr.msra.gmra.mrb[20].mxu1 %vm538_vm3, %v888_v34 }
 0x3ea   : > { %v597_v35 = vpop.f32.mrb[8].mxu1 }
 0x3eb   : > { %v1243_v36 = vpop.f32.mrb[9].mxu1  ;;  %v603_v58 = vpack.c.bf16 %v597_v35, %v597_v35 }
 0x3ec   : > { %v600_v37 = vpop.f32.mrb[10].mxu1 }
 0x3ed   : > { %v1244_v38 = vpop.f32.mrb[11].mxu1 }
 0x468   : > { %v709_v42 = vpop.f32.mrb[12].mxu1 }
 0x469   : > { %v715_v44 = vpack.c.bf16 %v709_v42, %v709_v42  ;;  %v1255_v45 = vpop.f32.mrb[13].mxu1 }
 0x46a   : > { %v712_v46 = vpop.f32.mrb[14].mxu1 }
 0x46b   : > { %939 = vrot.lane.b32.xlu0 %v715_v44, %s1471_s23  ;;  %v1256_v47 = vpop.f32.mrb[15].mxu1 }
 0x470   : > { %v820_v48 = vpop.f32.mrb[16].mxu1 }
 0x471   : > { %v826_v49 = vpack.c.bf16 %v820_v48, %v820_v48  ;;  %v1267_v50 = vpop.f32.mrb[17].mxu1 }
 0x472   : > { %v823_v51 = vpop.f32.mrb[18].mxu1 }
 0x473   : > { %942 = vrot.lane.b32.xlu1 %v826_v49, %s1470_s20  ;;  %v1268_v52 = vpop.f32.mrb[19].mxu1 }
 0x478   : > { %v931_v53 = vpop.f32.mrb[20].mxu1 }
 0x479   : > { %v937_v54 = vpack.c.bf16 %v931_v53, %v931_v53  ;;  %v1279_v55 = vpop.f32.mrb[21].mxu1 }
 0x47a   : > { %v934_v56 = vpop.f32.mrb[22].mxu1 }
 0x47b   : > { %945 = vrot.lane.b32.xlu0 %v937_v54, %s1472_s24  ;;  %v1280_v57 = vpop.f32.mrb[23].mxu1  ;;  %s335_s24 = sand.u32 1, %s1446_s10  }
 0x47c   : > { %s1159_s25 = sshll.u32 %s335_s24, 3  ;;  %s1070_s26 = scalar_lea.sflag [#allocation4], %s335_s24 }
 0x47d   : > { %s337_s16 = scalar_lea.vmem [#allocation3], %s1159_s25  ;;  %s1388_s25 = sshll.u32 %s1473_s12, 4  ;;  %s1389_s25 = int_to_ptr.vmem [resolvable:$false] %s1388_s25 }
 0x47e   : > { %s1084_s18 = sshll.u32 %s337_s16, 4  ;;  %s1390_s28 = scalar_lea.vmem %s1389_s25, 256  ;;  %s1718_s18 = int_to_ptr.vmem [resolvable:$true] %s1084_s18 }
 0x47f   : > { %s1384_s27 = scalar_lea.vmem %s1718_s18, 128  ;;  %p1391_p1 = scmp.lt.s32.totalorder %s1718_s18, %s1389_s25 }
 0x480   : > { %p1385_p12 = scmp.ne.s32.totalorder %s1718_s18, %s1384_s27  ;;  %p1392_p2 = scmp.lt.s32.totalorder %s1390_s28, %s1384_s27 }
 0x482   : > { %p1386_p13 = pnand %p1385_p12, %p1564_p4  ;;  %p1393_p3 = por %p1392_p2, %p1391_p1 }
 0x484   : > { %p1387_p0 = pneg %p1386_p13 }
 0x486   : > { %p1394_p5 = pnand %p1393_p3, %p1387_p0 }
 0x4dd   : > { %v940_v1 = vpop.permute.xlu0 %939 }
 0x4de   : > { %v949_v60 = vsel %vm491_vm2, %v603_v58, %v940_v1 }
 0x4e5   : > { %v943_v59 = vpop.permute.xlu1 %942 }
 0x4e6   : > { %v951_v61 = vsel %vm373_vm1, %v949_v60, %v943_v59 }
 0x4ed   : > { %v946_v62 = vpop.permute.xlu0 %945 }
 0x4ee   : > { %v954_v63 = vsel %vm952_vm5, %v951_v61, %v946_v62 }
 0x4ef   : > { %1290 = vmatmul.mubr.msk.bf16.vlgmr.msra.gmra.mrb[16].mxu0 %vm994_vm6, %v954_v63 }
 0x5c2   : > { %v1031_v2 = vpop.f32.mrb[16].mxu0 }
 0x5c3   : > { %v1032_v4 = vadd.f32 %v1178_v0, %v1031_v2  ;;  %v1291_v5 = vpop.f32.mrb[17].mxu0 }
 0x5c4   : > { %v1034_v6 = vpop.f32.mrb[18].mxu0 }
 0x5c5   : > { %v1292_v7 = vpop.f32.mrb[19].mxu0  ;;  %v1037_v8 = vadd.f32 %v1032_v4, %v1598_v3  ;;  %v1184_v3 = vld [vmem:[%s1771_s7] ss:$0 sm:$0xff] }
 0x5c7   : > { %v1038_v9 = vsel %vm373_vm1, %v1037_v8, 0.0 }
 0x5c8   : > { %1039 = vadd.xlane.f32.xlu1 %v1038_v9 }
 0x655   : > { %v1040_v10 = vpop.xlane.xlu1 %1039 }
 0x656   : > { %v1042_v11 = vmul.f32 0.03125, %v1040_v10 }
 0x658   : > { %v1043_v12 = vsub.f32 %v1037_v8, %v1042_v11 }
 0x65a   : > { %v1044_v13 = vmul.f32 %v1043_v12, %v1043_v12 }
 0x65c   : > { %v1045_v14 = vsel %vm373_vm1, %v1044_v13, 0.0 }
 0x65d   : > { %1046 = vadd.xlane.f32.xlu0 %v1045_v14 }
 0x6ea   : > { %v1047_v15 = vpop.xlane.xlu0 %1046 }
 0x6eb   : > { %v1048_v16 = vmul.f32 0.03125, %v1047_v15 }
 0x6ed   : > { %v1049_v17 = vadd.f32 1e-05, %v1048_v16 }
 0x6ef   : > { %1382 = vrsqrt.f32 %v1049_v17 }
 0x6f9   : > { %v1383_v18 = vpop.eup %1382 }
 0x6fa   : > { %v1051_v19 = vmul.f32 %v1383_v18, %v1043_v12 }
 0x6fc   : > { %v1059_v21 = vmul.f32 %v1184_v3, %v1051_v19 }
 0x6fe   : > { %v1067_v23 = vadd.f32 %v1185_v20, %v1059_v21 }
 0x700   : > { %1068 = vst.msk [vmem:[%s337_s16] sm:$0xff] %vm373_vm1, %v1067_v23 }
 0x701   : > { %1397 = shalt.err (!%p1394_p5)
}
 0x702   : > { %s1398_s24 = scalar_lea.hbm %s1716_s0, 128  ;;  %s1402_s16 = scalar_lea.hbm %s1773_s9, 256 }
 0x703   : > { %p1399_p6 = scmp.ne.s32.totalorder %s1716_s0, %s1398_s24  ;;  %p1403_p10 = scmp.lt.u32.totalorder %s1716_s0, %s1773_s9 }
 0x704   : > { %p1404_p11 = scmp.lt.u32.totalorder %s1402_s16, %s1398_s24  ;;  %p1406_p13 = scmp.lt.u32.totalorder %s1398_s24, %s1716_s0 }
 0x705   : > { %p1400_p7 = pnand %p1399_p6, %p1564_p4 }
 0x706   : > { %p1405_p12 = por %p1404_p11, %p1403_p10 }
 0x707   : > { %p1401_p9 = pneg %p1400_p7 }
 0x708   : > { %p1407_p0 = por %p1406_p13, %p1405_p12 }
 0x70a   : > { %p1408_p1 = pnand %p1407_p0, %p1401_p9 }
 0x70c   : > { %1411 = shalt.err (!%p1408_p1)
}
 0x70d   : > { %1293 = dma.vmem_to_hbm [thread:$0]  (%p1564_p4), %s1718_s18, 128, %s1716_s0, %s1070_s26  }
 0x70e PF: > { %p1299_p2 = scmp.ge.s32.totalorder %s1462_s14, 2  ;;  %s1096_s27 = sand.u32 1, %s1442_s30  }
 0x70f   : > { %s1097_s12 = scalar_lea.sflag [#allocation4], %s1096_s27 }
 0x710   : > { %p1296_p3 = pnand %p1299_p2, %p1571_p8 }
 0x712   : > { %1437 = dma.done.wait (!%p1296_p3), %s1097_s12, 128  }
 0x713   : > { %1439 = vsyncadd (!%p1296_p3), %s1097_s12, 4294967168  ;;  %s22_s14 = sadd.s32 1, %s1462_s14   ;;  %s1778_s30 = smov %s1446_s10 }
 0x714   : > { %p19_p5 = scmp.ge.s32.totalorder %s22_s14, 4   ;;  %s1779_s10 = smov %s1450_s11 }
 0x715   : > { %s1780_s11 = smov %s1577_s22  ;;  %s1781_s12 = smov %s1458_s13 }
 0x716   : > { %s1782_s13 = smov %s1784_s17  ;;  %21 = sbr.rel (!%p19_p5) target bundleno = 6 (0x6), region = 96 }
 0x71d   :  { %1102 = vsyncpa [#allocation4], 1 }
 0x71e   :  { %1104 = vsyncpa [#allocation4 + $0x1], 1 }

</bundles_post_ra>
